<compile_context>
chip_gen: v5e
topology: v5e:2x2
jax: 0.10.0
libtpu: 0.0.40
codegen_flags: <defaults>
</compile_context>

<pallas_src>
import functools

import jax
import jax.numpy as jnp
from jax.experimental import pallas as pl
from jax.experimental.pallas import tpu as pltpu


def _round_up(x, m):
    return ((x + m - 1) // m) * m


def _tile_for(n):
    """Adjacency row/col tile size and the matching padded N."""
    tile = 256 if n >= 256 else _round_up(max(n, 1), 128)
    return tile, _round_up(n, tile)


# ---------------------------------------------------------------------------
# Pass A: support = x @ W  (row-tiled; W is small and stays VMEM-resident).
# bf16 inputs, f32 MXU accumulation, bf16 output (feeds the adj matmul).
# ---------------------------------------------------------------------------
def _support_kernel(x_ref, w_ref, out_ref):
    out_ref[...] = jnp.dot(
        x_ref[...], w_ref[...], preferred_element_type=jnp.float32
    ).astype(out_ref.dtype)


def _support_matmul(xp, wp, tile):
    n_pad, k_in = xp.shape
    f_out = wp.shape[1]
    return pl.pallas_call(
        _support_kernel,
        out_shape=jax.ShapeDtypeStruct((n_pad, f_out), jnp.bfloat16),
        grid_spec=pltpu.PrefetchScalarGridSpec(
            num_scalar_prefetch=0,
            grid=(n_pad // tile,),
            in_specs=[
                pl.BlockSpec((tile, k_in), lambda i: (i, 0)),
                pl.BlockSpec((k_in, f_out), lambda i: (0, 0)),
            ],
            out_specs=pl.BlockSpec((tile, f_out), lambda i: (i, 0)),
        ),
        compiler_params=pltpu.CompilerParams(
            dimension_semantics=("parallel",)),
    )(xp, wp)


# ---------------------------------------------------------------------------
# Pass B: out = post(adj @ support + b)
# Grid: (row tile i  [parallel], adj-contraction tile k [arbitrary]).
# Resident f32 VMEM accumulator per row tile; bias add / activation /
# log_softmax happen once, at the last k step (no re-broadcast in the k loop).
# ---------------------------------------------------------------------------
def _aggregate_kernel(adj_ref, sup_ref, b_ref, out_ref, acc_ref, *,
                      activation, nvalid):
    k = pl.program_id(1)

    @pl.when(k == 0)
    def _():
        acc_ref[...] = jnp.zeros_like(acc_ref)

    acc_ref[...] += jnp.dot(
        adj_ref[...], sup_ref[...], preferred_element_type=jnp.float32)

    @pl.when(k == pl.num_programs(1) - 1)
    def _():
        h = acc_ref[...] + b_ref[...]   # bias broadcast once per row tile (f32)
        if activation == "relu":
            out_ref[...] = jnp.maximum(h, 0.0).astype(out_ref.dtype)
        else:
            # log_softmax over the valid class columns; padded lanes -> -inf.
            col = jax.lax.broadcasted_iota(jnp.int32, h.shape, 1)
            h = jnp.where(col < nvalid, h, -jnp.inf)
            m = jnp.max(h, axis=1, keepdims=True)
            shifted = h - m
            lse = jnp.log(jnp.sum(jnp.exp(shifted), axis=1, keepdims=True))
            out_ref[...] = (shifted - lse).astype(out_ref.dtype)


def _aggregate(adjp, sup, bp, tile, *, activation, nvalid, out_dtype):
    n_pad = adjp.shape[0]
    f_out = sup.shape[1]
    kernel = functools.partial(
        _aggregate_kernel, activation=activation, nvalid=nvalid)
    return pl.pallas_call(
        kernel,
        out_shape=jax.ShapeDtypeStruct((n_pad, f_out), out_dtype),
        grid_spec=pltpu.PrefetchScalarGridSpec(
            num_scalar_prefetch=0,
            grid=(n_pad // tile, n_pad // tile),
            in_specs=[
                pl.BlockSpec((tile, tile), lambda i, k: (i, k)),   # adj tile
                pl.BlockSpec((tile, f_out), lambda i, k: (k, 0)),  # support
                pl.BlockSpec((1, f_out), lambda i, k: (0, 0)),     # bias
            ],
            out_specs=pl.BlockSpec((tile, f_out), lambda i, k: (i, 0)),
            scratch_shapes=[pltpu.VMEM((tile, f_out), jnp.float32)],
        ),
        compiler_params=pltpu.CompilerParams(
            dimension_semantics=("parallel", "arbitrary")),
    )(adjp, sup, bp)


@jax.jit
def gcn_forward(x, adj, w1, b1, w2, b2):
    n, nfeat = x.shape
    nhid = w1.shape[1]
    nclass = w2.shape[1]

    tile, n_pad = _tile_for(n)
    kf_pad = _round_up(nfeat, 128)
    f1_pad = _round_up(nhid, 128)
    f2_pad = _round_up(nclass, 128)

    bf = jnp.bfloat16
    xp = jnp.zeros((n_pad, kf_pad), bf).at[:n, :nfeat].set(x.astype(bf))
    adjp = jnp.zeros((n_pad, n_pad), bf).at[:n, :n].set(adj.astype(bf))
    w1p = jnp.zeros((kf_pad, f1_pad), bf).at[:nfeat, :nhid].set(w1.astype(bf))
    b1p = jnp.zeros((1, f1_pad), jnp.float32).at[:, :nhid].set(
        b1.astype(jnp.float32))
    w2p = jnp.zeros((f1_pad, f2_pad), bf).at[:nhid, :nclass].set(w2.astype(bf))
    b2p = jnp.zeros((1, f2_pad), jnp.float32).at[:, :nclass].set(
        b2.astype(jnp.float32))

    # ---- GraphConvolution 1: h1 = relu(adj @ (x @ W1) + b1) ----
    sup1 = _support_matmul(xp, w1p, tile)
    h1 = _aggregate(adjp, sup1, b1p, tile,
                    activation="relu", nvalid=f1_pad, out_dtype=bf)

    # TODO(synk): F.dropout(training=True) would need pltpu.prng_random_bits;
    # eval-mode dropout is the identity, matching inference.

    # ---- GraphConvolution 2 + log_softmax(axis=1) ----
    sup2 = _support_matmul(h1, w2p, tile)
    out = _aggregate(adjp, sup2, b2p, tile,
                     activation="log_softmax", nvalid=nclass,
                     out_dtype=jnp.float32)
    return out[:n, :nclass]


def _init_gc_params(key, fan_in, fan_out):
    # GraphConvolution.reset_parameters(): uniform(-1/sqrt(out), 1/sqrt(out))
    kw, kb = jax.random.split(key)
    stdv = 1.0 / jnp.sqrt(jnp.float32(fan_out))
    w = jax.random.uniform(kw, (fan_in, fan_out), jnp.float32, -stdv, stdv)
    b = jax.random.uniform(kb, (1, fan_out), jnp.float32, -stdv, stdv)
    return w, b


def _reference(x, adj, w1, b1, w2, b2):
    """Mirrors the kernel's numerics: bf16 MXU inputs, f32 accumulation."""
    bf = jnp.bfloat16
    xb, adjb = x.astype(bf), adj.astype(bf)
    sup1 = jnp.dot(xb, w1.astype(bf),
                   preferred_element_type=jnp.float32).astype(bf)
    h1 = jnp.maximum(
        jnp.dot(adjb, sup1, preferred_element_type=jnp.float32) + b1, 0.0
    ).astype(bf)
    sup2 = jnp.dot(h1, w2.astype(bf),
                   preferred_element_type=jnp.float32).astype(bf)
    h2 = jnp.dot(adjb, sup2, preferred_element_type=jnp.float32) + b2
    return jax.nn.log_softmax(h2, axis=1)


if __name__ == "__main__":
    N, nfeat, nhid, nclass = 64, 32, 32, 16

    key = jax.random.PRNGKey(0)
    kx, kadj, k1, k2 = jax.random.split(key, 4)

    # Node features.
    x = jax.random.normal(kx, (N, nfeat), jnp.float32)

    # Symmetric row-normalized dense adjacency with self-loops.
    a = (jax.random.uniform(kadj, (N, N)) < 0.1).astype(jnp.float32)
    a = jnp.maximum(a, a.T) + jnp.eye(N, dtype=jnp.float32)
    adj = a / jnp.sum(a, axis=1, keepdims=True)

    w1, b1 = _init_gc_params(k1, nfeat, nhid)
    w2, b2 = _init_gc_params(k2, nhid, nclass)

    out = gcn_forward(x, adj, w1, b1, w2, b2)
    out = jax.block_until_ready(out)

    ref = _reference(x, adj, w1, b1, w2, b2)
    assert out.shape == (N, nclass)
    assert jnp.allclose(out, ref, atol=1e-3, rtol=1e-3), "mismatch vs reference"

    print("KERNEL_OK")
</pallas_src>

<mosaic_0001>
module attributes {stable_mosaic.version = 11 : i64} {
  func.func @_support_kernel(%arg0: i32, %arg1: memref<128x128xbf16, #tpu.memory_space<vmem>>, %arg2: memref<128x128xbf16, #tpu.memory_space<vmem>>, %arg3: memref<128x128xbf16, #tpu.memory_space<vmem>>) attributes {dimension_semantics = [#tpu.dimension_semantics<parallel>], iteration_bounds = array<i64: 1>, scalar_prefetch = 0 : i64, scratch_operands = 0 : i64, tpu.core_type = #tpu.core_type<tc>, window_params = [{transform_indices = @transform_0, window_bounds = array<i64: 128, 128>}, {pipeline_mode = #tpu.pipeline_mode<synchronous>, transform_indices = @transform_1, window_bounds = array<i64: 128, 128>}, {transform_indices = @transform_2, window_bounds = array<i64: 128, 128>}]} {
    %c0 = arith.constant 0 : index
    %c0_0 = arith.constant 0 : index
    %0 = vector.load %arg1[%c0, %c0_0] : memref<128x128xbf16, #tpu.memory_space<vmem>>, vector<128x128xbf16>
    %c0_1 = arith.constant 0 : index
    %c0_2 = arith.constant 0 : index
    %1 = vector.load %arg2[%c0_1, %c0_2] : memref<128x128xbf16, #tpu.memory_space<vmem>>, vector<128x128xbf16>
    %cst = arith.constant dense<0.000000e+00> : vector<128x128xf32>
    %2 = tpu.matmul %0, %1, %cst {dimension_numbers = #tpu.dot_dimension_numbers<[1], [0], [0], [1], [0, 0, 1, 1], [], []>} : vector<128x128xbf16>, vector<128x128xbf16>, vector<128x128xf32> -> vector<128x128xf32>
    %3 = arith.truncf %2 : vector<128x128xf32> to vector<128x128xbf16>
    %c0_3 = arith.constant 0 : index
    %c0_4 = arith.constant 0 : index
    %4 = vector.load %arg3[%c0_3, %c0_4] : memref<128x128xbf16, #tpu.memory_space<vmem>>, vector<128x128xbf16>
    tpu.vector_store %arg3[%c0_3, %c0_4], %3 {strides = array<i32>} : memref<128x128xbf16, #tpu.memory_space<vmem>>, vector<128x128xbf16>,
    return
  }
  func.func @transform_0(%arg0: i32) -> (i32, i32) {
    %c0_i32 = arith.constant 0 : i32
    %c0_i32_0 = arith.constant 0 : i32
    return %arg0, %c0_i32 : i32, i32
  }
  func.func @transform_1(%arg0: i32) -> (i32, i32) {
    %c0_i32 = arith.constant 0 : i32
    %c0_i32_0 = arith.constant 0 : i32
    %c0_i32_1 = arith.constant 0 : i32
    return %c0_i32, %c0_i32_0 : i32, i32
  }
  func.func @transform_2(%arg0: i32) -> (i32, i32) {
    %c0_i32 = arith.constant 0 : i32
    %c0_i32_0 = arith.constant 0 : i32
    return %arg0, %c0_i32 : i32, i32
  }
}

module attributes {stable_mosaic.version = 11 : i64} {
  func.func @_aggregate_kernel(%arg0: i32, %arg1: i32, %arg2: memref<128x128xbf16, #tpu.memory_space<vmem>>, %arg3: memref<128x128xbf16, #tpu.memory_space<vmem>>, %arg4: memref<1x128xf32, #tpu.memory_space<vmem>>, %arg5: memref<128x128xbf16, #tpu.memory_space<vmem>>, %arg6: memref<128x128xf32, #tpu.memory_space<vmem>>) attributes {dimension_semantics = [#tpu.dimension_semantics<parallel>, #tpu.dimension_semantics<arbitrary>], iteration_bounds = array<i64: 1, 1>, scalar_prefetch = 0 : i64, scratch_operands = 1 : i64, tpu.core_type = #tpu.core_type<tc>, window_params = [{transform_indices = @transform_0, window_bounds = array<i64: 128, 128>}, {transform_indices = @transform_1, window_bounds = array<i64: 128, 128>}, {pipeline_mode = #tpu.pipeline_mode<synchronous>, transform_indices = @transform_2, window_bounds = array<i64: 1, 128>}, {transform_indices = @transform_3, window_bounds = array<i64: 128, 128>}]} {
    %c0_i32 = arith.constant 0 : i32
    %0 = arith.cmpi eq, %arg1, %c0_i32 : i32
    %1 = arith.extui %0 : i1 to i32
    %c0_i32_0 = arith.constant 0 : i32
    %2 = arith.cmpi ne, %1, %c0_i32_0 : i32
    scf.if %2 {
      %cst_10 = arith.constant 0.000000e+00 : f32
      %12 = vector.broadcast %cst_10 : f32 to vector<128x128xf32>
      %c0_11 = arith.constant 0 : index
      %c0_12 = arith.constant 0 : index
      %13 = vector.load %arg6[%c0_11, %c0_12] : memref<128x128xf32, #tpu.memory_space<vmem>>, vector<128x128xf32>
      tpu.vector_store %arg6[%c0_11, %c0_12], %12 {strides = array<i32>} : memref<128x128xf32, #tpu.memory_space<vmem>>, vector<128x128xf32>,
    } else {
    }
    %c0 = arith.constant 0 : index
    %c0_1 = arith.constant 0 : index
    %3 = vector.load %arg6[%c0, %c0_1] : memref<128x128xf32, #tpu.memory_space<vmem>>, vector<128x128xf32>
    %c0_2 = arith.constant 0 : index
    %c0_3 = arith.constant 0 : index
    %4 = vector.load %arg2[%c0_2, %c0_3] : memref<128x128xbf16, #tpu.memory_space<vmem>>, vector<128x128xbf16>
    %c0_4 = arith.constant 0 : index
    %c0_5 = arith.constant 0 : index
    %5 = vector.load %arg3[%c0_4, %c0_5] : memref<128x128xbf16, #tpu.memory_space<vmem>>, vector<128x128xbf16>
    %cst = arith.constant dense<0.000000e+00> : vector<128x128xf32>
    %6 = tpu.matmul %4, %5, %cst {dimension_numbers = #tpu.dot_dimension_numbers<[1], [0], [0], [1], [0, 0, 1, 1], [], []>} : vector<128x128xbf16>, vector<128x128xbf16>, vector<128x128xf32> -> vector<128x128xf32>
    %7 = arith.addf %3, %6 : vector<128x128xf32>
    %c0_6 = arith.constant 0 : index
    %c0_7 = arith.constant 0 : index
    %8 = vector.load %arg6[%c0_6, %c0_7] : memref<128x128xf32, #tpu.memory_space<vmem>>, vector<128x128xf32>
    tpu.vector_store %arg6[%c0_6, %c0_7], %7 {strides = array<i32>} : memref<128x128xf32, #tpu.memory_space<vmem>>, vector<128x128xf32>,
    %c0_i32_8 = arith.constant 0 : i32
    %9 = arith.cmpi eq, %arg1, %c0_i32_8 : i32
    %10 = arith.extui %9 : i1 to i32
    %c0_i32_9 = arith.constant 0 : i32
    %11 = arith.cmpi ne, %10, %c0_i32_9 : i32
    scf.if %11 {
      %c0_10 = arith.constant 0 : index
      %c0_11 = arith.constant 0 : index
      %12 = vector.load %arg6[%c0_10, %c0_11] : memref<128x128xf32, #tpu.memory_space<vmem>>, vector<128x128xf32>
      %c0_12 = arith.constant 0 : index
      %c0_13 = arith.constant 0 : index
      %13 = vector.load %arg4[%c0_12, %c0_13] : memref<1x128xf32, #tpu.memory_space<vmem>>, vector<1x128xf32>
      %14 = vector.broadcast %13 : vector<1x128xf32> to vector<128x128xf32>
      %15 = arith.addf %12, %14 : vector<128x128xf32>
      %cst_14 = arith.constant 0.000000e+00 : f32
      %16 = vector.broadcast %cst_14 : f32 to vector<128x128xf32>
      %17 = arith.maximumf %15, %16 : vector<128x128xf32>
      %18 = arith.truncf %17 : vector<128x128xf32> to vector<128x128xbf16>
      %c0_15 = arith.constant 0 : index
      %c0_16 = arith.constant 0 : index
      %19 = vector.load %arg5[%c0_15, %c0_16] : memref<128x128xbf16, #tpu.memory_space<vmem>>, vector<128x128xbf16>
      tpu.vector_store %arg5[%c0_15, %c0_16], %18 {strides = array<i32>} : memref<128x128xbf16, #tpu.memory_space<vmem>>, vector<128x128xbf16>,
    } else {
    }
    return
  }
  func.func @transform_0(%arg0: i32, %arg1: i32) -> (i32, i32) {
    %c0_i32 = arith.constant 0 : i32
    return %arg0, %arg1 : i32, i32
  }
  func.func @transform_1(%arg0: i32, %arg1: i32) -> (i32, i32) {
    %c0_i32 = arith.constant 0 : i32
    %c0_i32_0 = arith.constant 0 : i32
    return %arg1, %c0_i32 : i32, i32
  }
  func.func @transform_2(%arg0: i32, %arg1: i32) -> (i32, i32) {
    %c0_i32 = arith.constant 0 : i32
    %c0_i32_0 = arith.constant 0 : i32
    %c0_i32_1 = arith.constant 0 : i32
    return %c0_i32, %c0_i32_0 : i32, i32
  }
  func.func @transform_3(%arg0: i32, %arg1: i32) -> (i32, i32) {
    %c0_i32 = arith.constant 0 : i32
    %c0_i32_0 = arith.constant 0 : i32
    return %arg0, %c0_i32 : i32, i32
  }
}

module attributes {stable_mosaic.version = 11 : i64} {
  func.func @_aggregate_kernel(%arg0: i32, %arg1: i32, %arg2: memref<128x128xbf16, #tpu.memory_space<vmem>>, %arg3: memref<128x128xbf16, #tpu.memory_space<vmem>>, %arg4: memref<1x128xf32, #tpu.memory_space<vmem>>, %arg5: memref<128x128xf32, #tpu.memory_space<vmem>>, %arg6: memref<128x128xf32, #tpu.memory_space<vmem>>) attributes {dimension_semantics = [#tpu.dimension_semantics<parallel>, #tpu.dimension_semantics<arbitrary>], iteration_bounds = array<i64: 1, 1>, scalar_prefetch = 0 : i64, scratch_operands = 1 : i64, tpu.core_type = #tpu.core_type<tc>, window_params = [{transform_indices = @transform_0, window_bounds = array<i64: 128, 128>}, {transform_indices = @transform_1, window_bounds = array<i64: 128, 128>}, {pipeline_mode = #tpu.pipeline_mode<synchronous>, transform_indices = @transform_2, window_bounds = array<i64: 1, 128>}, {transform_indices = @transform_3, window_bounds = array<i64: 128, 128>}]} {
    %c0_i32 = arith.constant 0 : i32
    %0 = arith.cmpi eq, %arg1, %c0_i32 : i32
    %1 = arith.extui %0 : i1 to i32
    %c0_i32_0 = arith.constant 0 : i32
    %2 = arith.cmpi ne, %1, %c0_i32_0 : i32
    scf.if %2 {
      %cst_10 = arith.constant 0.000000e+00 : f32
      %12 = vector.broadcast %cst_10 : f32 to vector<128x128xf32>
      %c0_11 = arith.constant 0 : index
      %c0_12 = arith.constant 0 : index
      %13 = vector.load %arg6[%c0_11, %c0_12] : memref<128x128xf32, #tpu.memory_space<vmem>>, vector<128x128xf32>
      tpu.vector_store %arg6[%c0_11, %c0_12], %12 {strides = array<i32>} : memref<128x128xf32, #tpu.memory_space<vmem>>, vector<128x128xf32>,
    } else {
    }
    %c0 = arith.constant 0 : index
    %c0_1 = arith.constant 0 : index
    %3 = vector.load %arg6[%c0, %c0_1] : memref<128x128xf32, #tpu.memory_space<vmem>>, vector<128x128xf32>
    %c0_2 = arith.constant 0 : index
    %c0_3 = arith.constant 0 : index
    %4 = vector.load %arg2[%c0_2, %c0_3] : memref<128x128xbf16, #tpu.memory_space<vmem>>, vector<128x128xbf16>
    %c0_4 = arith.constant 0 : index
    %c0_5 = arith.constant 0 : index
    %5 = vector.load %arg3[%c0_4, %c0_5] : memref<128x128xbf16, #tpu.memory_space<vmem>>, vector<128x128xbf16>
    %cst = arith.constant dense<0.000000e+00> : vector<128x128xf32>
    %6 = tpu.matmul %4, %5, %cst {dimension_numbers = #tpu.dot_dimension_numbers<[1], [0], [0], [1], [0, 0, 1, 1], [], []>} : vector<128x128xbf16>, vector<128x128xbf16>, vector<128x128xf32> -> vector<128x128xf32>
    %7 = arith.addf %3, %6 : vector<128x128xf32>
    %c0_6 = arith.constant 0 : index
    %c0_7 = arith.constant 0 : index
    %8 = vector.load %arg6[%c0_6, %c0_7] : memref<128x128xf32, #tpu.memory_space<vmem>>, vector<128x128xf32>
    tpu.vector_store %arg6[%c0_6, %c0_7], %7 {strides = array<i32>} : memref<128x128xf32, #tpu.memory_space<vmem>>, vector<128x128xf32>,
    %c0_i32_8 = arith.constant 0 : i32
    %9 = arith.cmpi eq, %arg1, %c0_i32_8 : i32
    %10 = arith.extui %9 : i1 to i32
    %c0_i32_9 = arith.constant 0 : i32
    %11 = arith.cmpi ne, %10, %c0_i32_9 : i32
    scf.if %11 {
      %c0_10 = arith.constant 0 : index
      %c0_11 = arith.constant 0 : index
      %12 = vector.load %arg6[%c0_10, %c0_11] : memref<128x128xf32, #tpu.memory_space<vmem>>, vector<128x128xf32>
      %c0_12 = arith.constant 0 : index
      %c0_13 = arith.constant 0 : index
      %13 = vector.load %arg4[%c0_12, %c0_13] : memref<1x128xf32, #tpu.memory_space<vmem>>, vector<1x128xf32>
      %14 = vector.broadcast %13 : vector<1x128xf32> to vector<128x128xf32>
      %15 = arith.addf %12, %14 : vector<128x128xf32>
      %16 = tpu.iota {dimensions = array<i32: 1>} : vector<128x128xi32>
      %c16_i32 = arith.constant 16 : i32
      %17 = vector.broadcast %c16_i32 : i32 to vector<128x128xi32>
      %18 = arith.cmpi slt, %16, %17 : vector<128x128xi32>
      %cst_14 = arith.constant 0xFF800000 : f32
      %19 = vector.broadcast %cst_14 : f32 to vector<128x128xf32>
      %20 = arith.select %18, %15, %19 : vector<128x128xi1>, vector<128x128xf32>
      %cst_15 = arith.constant dense<0xFF800000> : vector<128xf32>
      %21 = vector.multi_reduction <maximumf>, %20, %cst_15 [1] : vector<128x128xf32> to vector<128xf32>
      %22 = vector.shape_cast %21 : vector<128xf32> to vector<128x1xf32>
      %23 = vector.broadcast %22 : vector<128x1xf32> to vector<128x128xf32>
      %24 = arith.subf %20, %23 : vector<128x128xf32>
      %25 = math.exp %24 : vector<128x128xf32>
      %cst_16 = arith.constant dense<0.000000e+00> : vector<128xf32>
      %26 = vector.multi_reduction <add>, %25, %cst_16 [1] : vector<128x128xf32> to vector<128xf32>
      %27 = vector.shape_cast %26 : vector<128xf32> to vector<128x1xf32>
      %28 = math.log %27 : vector<128x1xf32>
      %29 = vector.broadcast %28 : vector<128x1xf32> to vector<128x128xf32>
      %30 = arith.subf %24, %29 : vector<128x128xf32>
      %c0_17 = arith.constant 0 : index
      %c0_18 = arith.constant 0 : index
      %31 = vector.load %arg5[%c0_17, %c0_18] : memref<128x128xf32, #tpu.memory_space<vmem>>, vector<128x128xf32>
      tpu.vector_store %arg5[%c0_17, %c0_18], %30 {strides = array<i32>} : memref<128x128xf32, #tpu.memory_space<vmem>>, vector<128x128xf32>,
    } else {
    }
    return
  }
  func.func @transform_0(%arg0: i32, %arg1: i32) -> (i32, i32) {
    %c0_i32 = arith.constant 0 : i32
    return %arg0, %arg1 : i32, i32
  }
  func.func @transform_1(%arg0: i32, %arg1: i32) -> (i32, i32) {
    %c0_i32 = arith.constant 0 : i32
    %c0_i32_0 = arith.constant 0 : i32
    return %arg1, %c0_i32 : i32, i32
  }
  func.func @transform_2(%arg0: i32, %arg1: i32) -> (i32, i32) {
    %c0_i32 = arith.constant 0 : i32
    %c0_i32_0 = arith.constant 0 : i32
    %c0_i32_1 = arith.constant 0 : i32
    return %c0_i32, %c0_i32_0 : i32, i32
  }
  func.func @transform_3(%arg0: i32, %arg1: i32) -> (i32, i32) {
    %c0_i32 = arith.constant 0 : i32
    %c0_i32_0 = arith.constant 0 : i32
    return %arg0, %c0_i32 : i32, i32
  }
}

</mosaic_0001>

<bundles_post_ra>
// kernel: gcn_forward.4
= control target key start
LH: loop header
LB: loop body
LE: loop exit
PB: predicated region body
PF: predicated region fallthrough
CT: control target
= control target key end

     0   :  { %s462_s1 = inlined_call_operand.vmem [shape: bf16[128,128], index: 1, kind: input, shape index: {}]   ;;  %s463_s0 = inlined_call_operand.vmem [shape: bf16[128,128], index: 0, kind: input, shape index: {}]   ;;  %s464_s2 = inlined_call_operand.vmem [shape: bf16[128,128], index: 2, kind: output, shape index: {}]  }
   0x1   :  { %v303_v0 = vld [vmem:[%s462_s1 + $0x38] sm:$0xff]  ;;  %v302_v1 = vld [vmem:[%s462_s1 + $0x30] sm:$0xff]  ;;  %v301_v2 = vld [vmem:[%s462_s1 + $0x28] sm:$0xff] }
   0x2   :  { %139 = vmatpush.bf16.msra.mxu0 %v303_v0  ;;  %351 = vmatpush.bf16.msra.mxu1 %v303_v0  ;;  %v300_v3 = vld [vmem:[%s462_s1 + $0x20] sm:$0xff]  ;;  %v299_v4 = vld [vmem:[%s462_s1 + $0x18] sm:$0xff]  ;;  %v298_v5 = vld [vmem:[%s462_s1 + $0x10] sm:$0xff] }
   0x3   :  { %352 = vmatpush.bf16.msra.mxu2 %v303_v0  ;;  %353 = vmatpush.bf16.msra.mxu3 %v303_v0  ;;  %v297_v6 = vld [vmem:[%s462_s1 + $0x8] sm:$0xff]  ;;  %v296_v7 = vld [vmem:[%s462_s1] sm:$0xff]  ;;  %v290_v9 = vld [vmem:[%s463_s0 + $0x10] sm:$0xff] }
   0x4   :  { %v288_v8 = vld [vmem:[%s463_s0] sm:$0xff]  ;;  %v294_v11 = vld [vmem:[%s463_s0 + $0x30] sm:$0xff]  ;;  %v289_v12 = vld [vmem:[%s463_s0 + $0x8] sm:$0xff] }
   0x5   :  { %v292_v10 = vld [vmem:[%s463_s0 + $0x20] sm:$0xff]  ;;  %v291_v13 = vld [vmem:[%s463_s0 + $0x18] sm:$0xff]  ;;  %v293_v14 = vld [vmem:[%s463_s0 + $0x28] sm:$0xff] }
   0x6   :  { %140 = vmatpush.bf16.msra.mxu0 %v302_v1  ;;  %354 = vmatpush.bf16.msra.mxu1 %v302_v1  ;;  %v295_v15 = vld [vmem:[%s463_s0 + $0x38] sm:$0xff] }
   0x7   :  { %355 = vmatpush.bf16.msra.mxu2 %v302_v1  ;;  %356 = vmatpush.bf16.msra.mxu3 %v302_v1 }
   0xa   :  { %141 = vmatpush.bf16.msra.mxu0 %v301_v2  ;;  %357 = vmatpush.bf16.msra.mxu1 %v301_v2 }
   0xb   :  { %358 = vmatpush.bf16.msra.mxu2 %v301_v2  ;;  %359 = vmatpush.bf16.msra.mxu3 %v301_v2 }
   0xe   :  { %142 = vmatpush.bf16.msra.mxu0 %v300_v3  ;;  %360 = vmatpush.bf16.msra.mxu1 %v300_v3 }
   0xf   :  { %361 = vmatpush.bf16.msra.mxu2 %v300_v3  ;;  %362 = vmatpush.bf16.msra.mxu3 %v300_v3 }
  0x12   :  { %143 = vmatpush.bf16.msra.mxu0 %v299_v4  ;;  %363 = vmatpush.bf16.msra.mxu1 %v299_v4 }
  0x13   :  { %364 = vmatpush.bf16.msra.mxu2 %v299_v4  ;;  %365 = vmatpush.bf16.msra.mxu3 %v299_v4 }
  0x16   :  { %144 = vmatpush.bf16.msra.mxu0 %v298_v5  ;;  %366 = vmatpush.bf16.msra.mxu1 %v298_v5 }
  0x17   :  { %367 = vmatpush.bf16.msra.mxu2 %v298_v5  ;;  %368 = vmatpush.bf16.msra.mxu3 %v298_v5 }
  0x1a   :  { %145 = vmatpush.bf16.msra.mxu0 %v297_v6  ;;  %369 = vmatpush.bf16.msra.mxu1 %v297_v6 }
  0x1b   :  { %370 = vmatpush.bf16.msra.mxu2 %v297_v6  ;;  %371 = vmatpush.bf16.msra.mxu3 %v297_v6 }
  0x1e   :  { %146 = vmatpush.bf16.msra.mxu0 %v296_v7  ;;  %372 = vmatpush.bf16.msra.mxu1 %v296_v7 }
  0x1f   :  { %373 = vmatpush.bf16.msra.mxu2 %v296_v7  ;;  %374 = vmatpush.bf16.msra.mxu3 %v296_v7 }
  0x21   :  { %147 = vmatmul.bf16.vlgmr.msra.gmra.mxu0 %v288_v8  ;;  %157 = vmatmul.bf16.vlgmr.msra.gmra.mxu1 %v290_v9 }
  0x22   :  { %167 = vmatmul.bf16.vlgmr.msra.gmra.mxu2 %v292_v10  ;;  %177 = vmatmul.bf16.vlgmr.msra.gmra.mxu3 %v294_v11 }
  0x31   :  { %152 = vmatmul.bf16.gmra.mxu0 %v289_v12  ;;  %162 = vmatmul.bf16.gmra.mxu1 %v291_v13 }
  0x32   :  { %172 = vmatmul.bf16.gmra.mxu2 %v293_v14  ;;  %182 = vmatmul.bf16.gmra.mxu3 %v295_v15 }
  0x9e   :  { %v148_v16 = vpop.f32.mrf.mxu0  ;;  %v158_v17 = vpop.f32.mrf.mxu1 }
  0xa5   :  { %v168_v18 = vpop.f32.mrf.mxu2  ;;  %v178_v19 = vpop.f32.mrf.mxu3 }
  0xa6   :  { %v150_v20 = vpop.f32.mrf.mxu0  ;;  %v160_v21 = vpop.f32.mrf.mxu1 }
  0xa7   :  { %v307_v22 = vpack.c.bf16 %v150_v20, %v148_v16  ;;  %v317_v23 = vpack.c.bf16 %v160_v21, %v158_v17 }
  0xa9   :  { %308 = vst [vmem:[%s464_s2] sm:$0xff] %v307_v22  }
  0xaa   :  { %345 = vst [vmem:[%s464_s2 + $0x10] sm:$0xff] %v317_v23  }
  0xad   :  { %v170_v24 = vpop.f32.mrf.mxu2  ;;  %v180_v25 = vpop.f32.mrf.mxu3 }
  0xae   :  { %v327_v26 = vpack.c.bf16 %v170_v24, %v168_v18  ;;  %v337_v27 = vpack.c.bf16 %v180_v25, %v178_v19  ;;  %v153_v28 = vpop.f32.mrf.mxu0  ;;  %v163_v29 = vpop.f32.mrf.mxu1 }
  0xb0   :  { %347 = vst [vmem:[%s464_s2 + $0x20] sm:$0xff] %v327_v26  }
  0xb1   :  { %349 = vst [vmem:[%s464_s2 + $0x30] sm:$0xff] %v337_v27  }
  0xb5   :  { %v173_v30 = vpop.f32.mrf.mxu2  ;;  %v183_v31 = vpop.f32.mrf.mxu3 }
  0xb6   :  { %v155_v32 = vpop.f32.mrf.mxu0  ;;  %v165_v33 = vpop.f32.mrf.mxu1 }
  0xb7   :  { %v312_v34 = vpack.c.bf16 %v155_v32, %v153_v28  ;;  %v322_v35 = vpack.c.bf16 %v165_v33, %v163_v29 }
  0xb9   :  { %344 = vst [vmem:[%s464_s2 + $0x8] sm:$0xff] %v312_v34  }
  0xba   :  { %346 = vst [vmem:[%s464_s2 + $0x18] sm:$0xff] %v322_v35  }
  0xbd   :  { %v175_v36 = vpop.f32.mrf.mxu2  ;;  %v185_v37 = vpop.f32.mrf.mxu3 }
  0xbe   :  { %v332_v38 = vpack.c.bf16 %v175_v36, %v173_v30  ;;  %v342_v39 = vpack.c.bf16 %v185_v37, %v183_v31 }
  0xc0   :  { %348 = vst [vmem:[%s464_s2 + $0x28] sm:$0xff] %v332_v38  }
  0xc1   :  { %350 = vst [vmem:[%s464_s2 + $0x38] sm:$0xff] %v342_v39  }

// kernel: gcn_forward.5
= control target key start
LH: loop header
LB: loop body
LE: loop exit
PB: predicated region body
PF: predicated region fallthrough
CT: control target
= control target key end

     0   :  { %s597_s1 = inlined_call_operand.vmem [shape: bf16[128,128], index: 1, kind: input, shape index: {}]   ;;  %s598_s2 = inlined_call_operand.vmem [shape: f32[1,128], index: 2, kind: input, shape index: {}]   ;;  %s599_s0 = inlined_call_operand.vmem [shape: bf16[128,128], index: 0, kind: input, shape index: {}]   ;;  %s600_s3 = inlined_call_operand.vmem [shape: bf16[128,128], index: 3, kind: output, shape index: {}]  }
   0x1   :  { %v429_v0 = vld [vmem:[%s597_s1 + $0x38] sm:$0xff]  ;;  %v428_v1 = vld [vmem:[%s597_s1 + $0x30] sm:$0xff]  ;;  %v427_v2 = vld [vmem:[%s597_s1 + $0x28] sm:$0xff] }
   0x2   :  { %178 = vmatpush.bf16.msra.mxu0 %v429_v0  ;;  %477 = vmatpush.bf16.msra.mxu1 %v429_v0  ;;  %v426_v3 = vld [vmem:[%s597_s1 + $0x20] sm:$0xff]  ;;  %v425_v4 = vld [vmem:[%s597_s1 + $0x18] sm:$0xff]  ;;  %v424_v5 = vld [vmem:[%s597_s1 + $0x10] sm:$0xff] }
   0x3   :  { %478 = vmatpush.bf16.msra.mxu2 %v429_v0  ;;  %479 = vmatpush.bf16.msra.mxu3 %v429_v0  ;;  %v423_v6 = vld [vmem:[%s597_s1 + $0x8] sm:$0xff]  ;;  %v422_v7 = vld [vmem:[%s597_s1] sm:$0xff]  ;;  %v416_v9 = vld [vmem:[%s599_s0 + $0x10] sm:$0xff] }
   0x4   :  { %v414_v8 = vld [vmem:[%s599_s0] sm:$0xff]  ;;  %v420_v11 = vld [vmem:[%s599_s0 + $0x30] sm:$0xff]  ;;  %v415_v12 = vld [vmem:[%s599_s0 + $0x8] sm:$0xff] }
   0x5   :  { %v418_v10 = vld [vmem:[%s599_s0 + $0x20] sm:$0xff]  ;;  %v417_v13 = vld [vmem:[%s599_s0 + $0x18] sm:$0xff]  ;;  %v419_v14 = vld [vmem:[%s599_s0 + $0x28] sm:$0xff] }
   0x6   :  { %179 = vmatpush.bf16.msra.mxu0 %v428_v1  ;;  %480 = vmatpush.bf16.msra.mxu1 %v428_v1  ;;  %v421_v15 = vld [vmem:[%s599_s0 + $0x38] sm:$0xff]  ;;  %v501_v18 = vld [vmem:[%s598_s2] ss:$0 sm:$0xff] }
   0x7   :  { %481 = vmatpush.bf16.msra.mxu2 %v428_v1  ;;  %482 = vmatpush.bf16.msra.mxu3 %v428_v1 }
   0xa   :  { %180 = vmatpush.bf16.msra.mxu0 %v427_v2  ;;  %483 = vmatpush.bf16.msra.mxu1 %v427_v2 }
   0xb   :  { %484 = vmatpush.bf16.msra.mxu2 %v427_v2  ;;  %485 = vmatpush.bf16.msra.mxu3 %v427_v2 }
   0xe   :  { %181 = vmatpush.bf16.msra.mxu0 %v426_v3  ;;  %486 = vmatpush.bf16.msra.mxu1 %v426_v3 }
   0xf   :  { %487 = vmatpush.bf16.msra.mxu2 %v426_v3  ;;  %488 = vmatpush.bf16.msra.mxu3 %v426_v3 }
  0x12   :  { %182 = vmatpush.bf16.msra.mxu0 %v425_v4  ;;  %489 = vmatpush.bf16.msra.mxu1 %v425_v4 }
  0x13   :  { %490 = vmatpush.bf16.msra.mxu2 %v425_v4  ;;  %491 = vmatpush.bf16.msra.mxu3 %v425_v4 }
  0x16   :  { %183 = vmatpush.bf16.msra.mxu0 %v424_v5  ;;  %492 = vmatpush.bf16.msra.mxu1 %v424_v5 }
  0x17   :  { %493 = vmatpush.bf16.msra.mxu2 %v424_v5  ;;  %494 = vmatpush.bf16.msra.mxu3 %v424_v5 }
  0x1a   :  { %184 = vmatpush.bf16.msra.mxu0 %v423_v6  ;;  %495 = vmatpush.bf16.msra.mxu1 %v423_v6 }
  0x1b   :  { %496 = vmatpush.bf16.msra.mxu2 %v423_v6  ;;  %497 = vmatpush.bf16.msra.mxu3 %v423_v6 }
  0x1e   :  { %185 = vmatpush.bf16.msra.mxu0 %v422_v7  ;;  %498 = vmatpush.bf16.msra.mxu1 %v422_v7 }
  0x1f   :  { %499 = vmatpush.bf16.msra.mxu2 %v422_v7  ;;  %500 = vmatpush.bf16.msra.mxu3 %v422_v7 }
  0x21   :  { %186 = vmatmul.bf16.vlgmr.msra.gmra.mxu0 %v414_v8  ;;  %196 = vmatmul.bf16.vlgmr.msra.gmra.mxu1 %v416_v9 }
  0x22   :  { %206 = vmatmul.bf16.vlgmr.msra.gmra.mxu2 %v418_v10  ;;  %216 = vmatmul.bf16.vlgmr.msra.gmra.mxu3 %v420_v11 }
  0x31   :  { %191 = vmatmul.bf16.gmra.mxu0 %v415_v12  ;;  %201 = vmatmul.bf16.gmra.mxu1 %v417_v13 }
  0x32   :  { %211 = vmatmul.bf16.gmra.mxu2 %v419_v14  ;;  %221 = vmatmul.bf16.gmra.mxu3 %v421_v15 }
  0x9e   :  { %v187_v16 = vpop.f32.mrf.mxu0  ;;  %v197_v17 = vpop.f32.mrf.mxu1 }
  0x9f   :  { %v282_v19 = vadd.f32 %v501_v18, %v187_v16  ;;  %v286_v20 = vadd.f32 %v501_v18, %v197_v17 }
  0xa1   :  { %v298_v27 = vmax.f32 %v282_v19, 0.0  ;;  %v302_v28 = vmax.f32 %v286_v20, 0.0 }
  0xa5   :  { %v207_v21 = vpop.f32.mrf.mxu2  ;;  %v217_v22 = vpop.f32.mrf.mxu3 }
  0xa6   :  { %v189_v23 = vpop.f32.mrf.mxu0  ;;  %v199_v24 = vpop.f32.mrf.mxu1  ;;  %v290_v33 = vadd.f32 %v501_v18, %v207_v21  ;;  %v294_v34 = vadd.f32 %v501_v18, %v217_v22 }
  0xa7   :  { %v283_v25 = vadd.f32 %v501_v18, %v189_v23  ;;  %v287_v26 = vadd.f32 %v501_v18, %v199_v24 }
  0xa8   :  { %v306_v41 = vmax.f32 %v290_v33, 0.0  ;;  %v310_v42 = vmax.f32 %v294_v34, 0.0 }
  0xa9   :  { %v299_v29 = vmax.f32 %v283_v25, 0.0  ;;  %v303_v30 = vmax.f32 %v287_v26, 0.0 }
  0xab   :  { %v433_v31 = vpack.c.bf16 %v299_v29, %v298_v27  ;;  %v443_v32 = vpack.c.bf16 %v303_v30, %v302_v28 }
  0xad   :  { %434 = vst [vmem:[%s600_s3] sm:$0xff] %v433_v31   ;;  %v209_v35 = vpop.f32.mrf.mxu2  ;;  %v219_v36 = vpop.f32.mrf.mxu3 }
  0xae   :  { %471 = vst [vmem:[%s600_s3 + $0x10] sm:$0xff] %v443_v32   ;;  %v291_v37 = vadd.f32 %v501_v18, %v209_v35  ;;  %v295_v38 = vadd.f32 %v501_v18, %v219_v36  ;;  %v192_v39 = vpop.f32.mrf.mxu0  ;;  %v202_v40 = vpop.f32.mrf.mxu1 }
  0xaf   :  { %v284_v47 = vadd.f32 %v501_v18, %v192_v39  ;;  %v288_v48 = vadd.f32 %v501_v18, %v202_v40 }
  0xb0   :  { %v307_v43 = vmax.f32 %v291_v37, 0.0  ;;  %v311_v44 = vmax.f32 %v295_v38, 0.0 }
  0xb1   :  { %v300_v55 = vmax.f32 %v284_v47, 0.0  ;;  %v304_v56 = vmax.f32 %v288_v48, 0.0 }
  0xb2   :  { %v453_v45 = vpack.c.bf16 %v307_v43, %v306_v41  ;;  %v463_v46 = vpack.c.bf16 %v311_v44, %v310_v42 }
  0xb4   :  { %473 = vst [vmem:[%s600_s3 + $0x20] sm:$0xff] %v453_v45  }
  0xb5   :  { %475 = vst [vmem:[%s600_s3 + $0x30] sm:$0xff] %v463_v46   ;;  %v212_v49 = vpop.f32.mrf.mxu2  ;;  %v222_v50 = vpop.f32.mrf.mxu3 }
  0xb6   :  { %v194_v51 = vpop.f32.mrf.mxu0  ;;  %v204_v52 = vpop.f32.mrf.mxu1  ;;  %v292_v61 = vadd.f32 %v501_v18, %v212_v49  ;;  %v296_v62 = vadd.f32 %v501_v18, %v222_v50 }
  0xb7   :  { %v285_v53 = vadd.f32 %v501_v18, %v194_v51  ;;  %v289_v54 = vadd.f32 %v501_v18, %v204_v52 }
  0xb8   :  { %v308_v3 = vmax.f32 %v292_v61, 0.0  ;;  %v312_v4 = vmax.f32 %v296_v62, 0.0 }
  0xb9   :  { %v301_v57 = vmax.f32 %v285_v53, 0.0  ;;  %v305_v58 = vmax.f32 %v289_v54, 0.0 }
  0xbb   :  { %v438_v59 = vpack.c.bf16 %v301_v57, %v300_v55  ;;  %v448_v60 = vpack.c.bf16 %v305_v58, %v304_v56 }
  0xbd   :  { %470 = vst [vmem:[%s600_s3 + $0x8] sm:$0xff] %v438_v59   ;;  %v214_v63 = vpop.f32.mrf.mxu2  ;;  %v224_v0 = vpop.f32.mrf.mxu3 }
  0xbe   :  { %472 = vst [vmem:[%s600_s3 + $0x18] sm:$0xff] %v448_v60   ;;  %v293_v1 = vadd.f32 %v501_v18, %v214_v63  ;;  %v297_v2 = vadd.f32 %v501_v18, %v224_v0 }
  0xc0   :  { %v309_v5 = vmax.f32 %v293_v1, 0.0  ;;  %v313_v6 = vmax.f32 %v297_v2, 0.0 }
  0xc2   :  { %v458_v7 = vpack.c.bf16 %v309_v5, %v308_v3  ;;  %v468_v8 = vpack.c.bf16 %v313_v6, %v312_v4 }
  0xc4   :  { %474 = vst [vmem:[%s600_s3 + $0x28] sm:$0xff] %v458_v7  }
  0xc5   :  { %476 = vst [vmem:[%s600_s3 + $0x38] sm:$0xff] %v468_v8  }

// kernel: gcn_forward.7
= control target key start
LH: loop header
LB: loop body
LE: loop exit
PB: predicated region body
PF: predicated region fallthrough
CT: control target
= control target key end

     0   :  { %v298_v16 = vlaneseq  ;;  %s942_s1 = inlined_call_operand.vmem [shape: bf16[128,128], index: 1, kind: input, shape index: {}]   ;;  %s943_s2 = inlined_call_operand.vmem [shape: f32[1,128], index: 2, kind: input, shape index: {}]   ;;  %s944_s0 = inlined_call_operand.vmem [shape: bf16[128,128], index: 0, kind: input, shape index: {}]   ;;  %s945_s3 = inlined_call_operand.vmem [shape: f32[128,128], index: 3, kind: output, shape index: {}]  }
   0x1   :  { %v576_v0 = vld [vmem:[%s942_s1 + $0x38] sm:$0xff]  ;;  %v575_v1 = vld [vmem:[%s942_s1 + $0x30] sm:$0xff]  ;;  %v574_v2 = vld [vmem:[%s942_s1 + $0x28] sm:$0xff] }
   0x2   :  { %178 = vmatpush.bf16.msra.mxu0 %v576_v0  ;;  %577 = vmatpush.bf16.msra.mxu1 %v576_v0  ;;  %v573_v3 = vld [vmem:[%s942_s1 + $0x20] sm:$0xff]  ;;  %v572_v4 = vld [vmem:[%s942_s1 + $0x18] sm:$0xff]  ;;  %v571_v5 = vld [vmem:[%s942_s1 + $0x10] sm:$0xff]  ;;  %v734_v17 = vand.u32 127, %v298_v16 }
   0x3   :  { %578 = vmatpush.bf16.msra.mxu2 %v576_v0  ;;  %579 = vmatpush.bf16.msra.mxu3 %v576_v0  ;;  %v570_v6 = vld [vmem:[%s942_s1 + $0x8] sm:$0xff]  ;;  %v569_v7 = vld [vmem:[%s942_s1] sm:$0xff]  ;;  %v563_v9 = vld [vmem:[%s944_s0 + $0x10] sm:$0xff] }
   0x4   :  { %v561_v8 = vld [vmem:[%s944_s0] sm:$0xff]  ;;  %v567_v11 = vld [vmem:[%s944_s0 + $0x30] sm:$0xff]  ;;  %v562_v12 = vld [vmem:[%s944_s0 + $0x8] sm:$0xff]  ;;  %vm300_vm0 = vcmp.lt.s32.totalorder %v734_v17, 16 }
   0x5   :  { %v565_v10 = vld [vmem:[%s944_s0 + $0x20] sm:$0xff]  ;;  %v564_v13 = vld [vmem:[%s944_s0 + $0x18] sm:$0xff]  ;;  %v566_v14 = vld [vmem:[%s944_s0 + $0x28] sm:$0xff] }
   0x6   :  { %179 = vmatpush.bf16.msra.mxu0 %v575_v1  ;;  %580 = vmatpush.bf16.msra.mxu1 %v575_v1  ;;  %v568_v15 = vld [vmem:[%s944_s0 + $0x38] sm:$0xff]  ;;  %v739_v18 = vld [vmem:[%s943_s2] ss:$0 sm:$0xff] }
   0x7   :  { %581 = vmatpush.bf16.msra.mxu2 %v575_v1  ;;  %582 = vmatpush.bf16.msra.mxu3 %v575_v1 }
   0xa   :  { %180 = vmatpush.bf16.msra.mxu0 %v574_v2  ;;  %583 = vmatpush.bf16.msra.mxu1 %v574_v2 }
   0xb   :  { %584 = vmatpush.bf16.msra.mxu2 %v574_v2  ;;  %585 = vmatpush.bf16.msra.mxu3 %v574_v2 }
   0xe   :  { %181 = vmatpush.bf16.msra.mxu0 %v573_v3  ;;  %586 = vmatpush.bf16.msra.mxu1 %v573_v3 }
   0xf   :  { %587 = vmatpush.bf16.msra.mxu2 %v573_v3  ;;  %588 = vmatpush.bf16.msra.mxu3 %v573_v3 }
  0x12   :  { %182 = vmatpush.bf16.msra.mxu0 %v572_v4  ;;  %589 = vmatpush.bf16.msra.mxu1 %v572_v4 }
  0x13   :  { %590 = vmatpush.bf16.msra.mxu2 %v572_v4  ;;  %591 = vmatpush.bf16.msra.mxu3 %v572_v4 }
  0x16   :  { %183 = vmatpush.bf16.msra.mxu0 %v571_v5  ;;  %592 = vmatpush.bf16.msra.mxu1 %v571_v5 }
  0x17   :  { %593 = vmatpush.bf16.msra.mxu2 %v571_v5  ;;  %594 = vmatpush.bf16.msra.mxu3 %v571_v5 }
  0x1a   :  { %184 = vmatpush.bf16.msra.mxu0 %v570_v6  ;;  %595 = vmatpush.bf16.msra.mxu1 %v570_v6 }
  0x1b   :  { %596 = vmatpush.bf16.msra.mxu2 %v570_v6  ;;  %597 = vmatpush.bf16.msra.mxu3 %v570_v6 }
  0x1e   :  { %185 = vmatpush.bf16.msra.mxu0 %v569_v7  ;;  %598 = vmatpush.bf16.msra.mxu1 %v569_v7 }
  0x1f   :  { %599 = vmatpush.bf16.msra.mxu2 %v569_v7  ;;  %600 = vmatpush.bf16.msra.mxu3 %v569_v7 }
  0x21   :  { %186 = vmatmul.bf16.vlgmr.msra.gmra.mxu0 %v561_v8  ;;  %196 = vmatmul.bf16.vlgmr.msra.gmra.mxu1 %v563_v9 }
  0x22   :  { %206 = vmatmul.bf16.vlgmr.msra.gmra.mxu2 %v565_v10  ;;  %216 = vmatmul.bf16.vlgmr.msra.gmra.mxu3 %v567_v11 }
  0x31   :  { %191 = vmatmul.bf16.gmra.mxu0 %v562_v12  ;;  %201 = vmatmul.bf16.gmra.mxu1 %v564_v13 }
  0x32   :  { %211 = vmatmul.bf16.gmra.mxu2 %v566_v14  ;;  %221 = vmatmul.bf16.gmra.mxu3 %v568_v15 }
  0x9e   :  { %v187_v19 = vpop.f32.mrf.mxu0  ;;  %v197_v20 = vpop.f32.mrf.mxu1 }
  0x9f   :  { %v282_v21 = vadd.f32 %v739_v18, %v187_v19  ;;  %v286_v22 = vadd.f32 %v739_v18, %v197_v20 }
  0xa1   :  { %v305_v23 = vsel %vm300_vm0, %v286_v22, -inf  ;;  %v301_v24 = vsel %vm300_vm0, %v282_v21, -inf }
  0xa2   :  { %325 = vmax.xlane.f32.xlu2 %v305_v23  ;;  %317 = vmax.xlane.f32.xlu0 %v301_v24 }
  0xa5   :  { %v207_v25 = vpop.f32.mrf.mxu2  ;;  %v217_v26 = vpop.f32.mrf.mxu3 }
  0xa6   :  { %v290_v27 = vadd.f32 %v739_v18, %v207_v25  ;;  %v294_v28 = vadd.f32 %v739_v18, %v217_v26  ;;  %v189_v29 = vpop.f32.mrf.mxu0  ;;  %v199_v32 = vpop.f32.mrf.mxu1 }
  0xa7   :  { %v283_v33 = vadd.f32 %v739_v18, %v189_v29  ;;  %v287_v34 = vadd.f32 %v739_v18, %v199_v32 }
  0xa8   :  { %v309_v30 = vsel %vm300_vm0, %v290_v27, -inf  ;;  %v313_v31 = vsel %vm300_vm0, %v294_v28, -inf }
  0xa9   :  { %v306_v39 = vsel %vm300_vm0, %v287_v34, -inf  ;;  %v302_v40 = vsel %vm300_vm0, %v283_v33, -inf }
  0xaa   :  { %333 = vmax.xlane.f32.xlu2 %v309_v30  ;;  %341 = vmax.xlane.f32.xlu0 %v313_v31 }
  0xad   :  { %v209_v35 = vpop.f32.mrf.mxu2  ;;  %v219_v36 = vpop.f32.mrf.mxu3 }
  0xae   :  { %v192_v37 = vpop.f32.mrf.mxu0  ;;  %v291_v42 = vadd.f32 %v739_v18, %v209_v35  ;;  %v202_v47 = vpop.f32.mrf.mxu1  ;;  %v295_v1 = vadd.f32 %v739_v18, %v219_v36 }
  0xaf   :  { %v284_v38 = vadd.f32 %v739_v18, %v192_v37  ;;  %v288_v50 = vadd.f32 %v739_v18, %v202_v47 }
  0xb0   :  { %v774_v48 = vsel %vm300_vm0, %v291_v42, -inf  ;;  %v817_v2 = vsel %vm300_vm0, %v295_v1, -inf }
  0xb1   :  { %v763_v41 = vsel %vm300_vm0, %v284_v38, -inf  ;;  %v783_v54 = vsel %vm300_vm0, %v288_v50, -inf }
  0xb2   :  { %327 = vmax.xlane.f32.xlu2 %v306_v39  ;;  %319 = vmax.xlane.f32.xlu0 %v302_v40 }
  0xb3   :  { %321 = vmax.xlane.f32.xlu1 %v763_v41 }
  0xb5   :  { %v212_v43 = vpop.f32.mrf.mxu2  ;;  %v222_v45 = vpop.f32.mrf.mxu3 }
  0xb6   :  { %v292_v44 = vadd.f32 %v739_v18, %v212_v43  ;;  %v194_v49 = vpop.f32.mrf.mxu0  ;;  %v296_v57 = vadd.f32 %v739_v18, %v222_v45  ;;  %v204_v59 = vpop.f32.mrf.mxu1 }
  0xb7   :  { %v285_v52 = vadd.f32 %v739_v18, %v194_v49  ;;  %v289_v61 = vadd.f32 %v739_v18, %v204_v59 }
  0xb8   :  { %v770_v46 = vsel %vm300_vm0, %v292_v44, -inf  ;;  %v801_v62 = vsel %vm300_vm0, %v296_v57, -inf }
  0xb9   :  { %v794_v58 = vsel %vm300_vm0, %v285_v52, -inf  ;;  %v811_v0 = vsel %vm300_vm0, %v289_v61, -inf }
  0xba   :  { %335 = vmax.xlane.f32.xlu0 %v774_v48 }
  0xbb   :  { %337 = vmax.xlane.f32.xlu1 %v770_v46 }
  0xbd   :  { %v214_v51 = vpop.f32.mrf.mxu2  ;;  %v224_v56 = vpop.f32.mrf.mxu3 }
  0xbe   :  { %v293_v53 = vadd.f32 %v739_v18, %v214_v51  ;;  %v297_v60 = vadd.f32 %v739_v18, %v224_v56 }
  0xc0   :  { %v787_v55 = vsel %vm300_vm0, %v293_v53, -inf  ;;  %v805_v63 = vsel %vm300_vm0, %v297_v60, -inf }
  0xc1   :  { %339 = vmax.xlane.f32.xlu2 %v787_v55 }
  0xc2   :  { %329 = vmax.xlane.f32.xlu0 %v783_v54 }
  0xc3   :  { %323 = vmax.xlane.f32.xlu1 %v794_v58 }
  0xc9   :  { %345 = vmax.xlane.f32.xlu2 %v801_v62 }
  0xca   :  { %347 = vmax.xlane.f32.xlu0 %v805_v63 }
  0xcb   :  { %331 = vmax.xlane.f32.xlu1 %v811_v0 }
  0xd3   :  { %343 = vmax.xlane.f32.xlu1 %v817_v2 }
 0x115   :  { %v326_v3 = vpop.xlane.xlu2 %325  ;;  %v318_v4 = vpop.xlane.xlu0 %317 }
 0x116   :  { %v820_v5 = vsub.f32 %v305_v23, %v326_v3  ;;  %v822_v6 = vsub.f32 %v301_v24, %v318_v4 }
 0x118   :  { %v373_v7 = vmul.f32 1.442695, %v820_v5  ;;  %v365_v8 = vmul.f32 1.442695, %v822_v6 }
 0x11a   :  { %602 = vpow2.f32 %v373_v7 }
 0x11b   :  { %604 = vpow2.f32 %v365_v8 }
 0x11d   :  { %v334_v9 = vpop.xlane.xlu2 %333  ;;  %v342_v10 = vpop.xlane.xlu0 %341 }
 0x11e   :  { %v826_v11 = vsub.f32 %v309_v30, %v334_v9  ;;  %v828_v12 = vsub.f32 %v313_v31, %v342_v10 }
 0x120   :  { %v603_v13 = vpop.eup %602  ;;  %v381_v14 = vmul.f32 1.442695, %v826_v11  ;;  %v389_v15 = vmul.f32 1.442695, %v828_v12 }
 0x121   :  { %v605_v16 = vpop.eup %604  ;;  %405 = vadd.xlane.f32.xlu2 %v603_v13 }
 0x122   :  { %606 = vpow2.f32 %v381_v14  ;;  %397 = vadd.xlane.f32.xlu1 %v605_v16 }
 0x123   :  { %608 = vpow2.f32 %v389_v15 }
 0x125   :  { %v328_v17 = vpop.xlane.xlu2 %327  ;;  %v320_v18 = vpop.xlane.xlu0 %319 }
 0x126   :  { %v832_v19 = vsub.f32 %v306_v39, %v328_v17  ;;  %v834_v20 = vsub.f32 %v302_v40, %v320_v18  ;;  %v322_v21 = vpop.xlane.xlu1 %321 }
 0x127   :  { %v839_v26 = vsub.f32 %v763_v41, %v322_v21 }
 0x128   :  { %v607_v22 = vpop.eup %606  ;;  %v375_v23 = vmul.f32 1.442695, %v832_v19  ;;  %v367_v24 = vmul.f32 1.442695, %v834_v20 }
 0x129   :  { %v609_v25 = vpop.eup %608  ;;  %413 = vadd.xlane.f32.xlu0 %v607_v22  ;;  %v369_v27 = vmul.f32 1.442695, %v839_v26 }
 0x12a   :  { %610 = vpow2.f32 %v375_v23  ;;  %421 = vadd.xlane.f32.xlu1 %v609_v25 }
 0x12b   :  { %612 = vpow2.f32 %v367_v24 }
 0x12c   :  { %614 = vpow2.f32 %v369_v27 }
 0x12d   :  { %v336_v28 = vpop.xlane.xlu0 %335 }
 0x12e   :  { %v843_v29 = vsub.f32 %v774_v48, %v336_v28  ;;  %v338_v30 = vpop.xlane.xlu1 %337 }
 0x12f   :  { %v846_v31 = vsub.f32 %v770_v46, %v338_v30 }
 0x130   :  { %v611_v32 = vpop.eup %610  ;;  %v383_v33 = vmul.f32 1.442695, %v843_v29 }
 0x131   :  { %v613_v34 = vpop.eup %612  ;;  %v385_v35 = vmul.f32 1.442695, %v846_v31  ;;  %407 = vadd.xlane.f32.xlu0 %v611_v32 }
 0x132   :  { %616 = vpow2.f32 %v383_v33  ;;  %399 = vadd.xlane.f32.xlu2 %v613_v34  ;;  %v615_v41 = vpop.eup %614 }
 0x133   :  { %618 = vpow2.f32 %v385_v35 }
 0x134   :  { %v340_v36 = vpop.xlane.xlu2 %339 }
 0x135   :  { %v851_v37 = vsub.f32 %v787_v55, %v340_v36  ;;  %v330_v38 = vpop.xlane.xlu0 %329 }
 0x136   :  { %v854_v39 = vsub.f32 %v783_v54, %v330_v38  ;;  %v324_v40 = vpop.xlane.xlu1 %323 }
 0x137   :  { %v387_v42 = vmul.f32 1.442695, %v851_v37  ;;  %v859_v46 = vsub.f32 %v794_v58, %v324_v40 }
 0x138   :  { %v617_v43 = vpop.eup %616  ;;  %v377_v44 = vmul.f32 1.442695, %v854_v39 }
 0x139   :  { %v619_v45 = vpop.eup %618  ;;  %620 = vpow2.f32 %v387_v42  ;;  %401 = vadd.xlane.f32.xlu0 %v615_v41  ;;  %415 = vadd.xlane.f32.xlu1 %v617_v43  ;;  %v371_v48 = vmul.f32 1.442695, %v859_v46 }
 0x13a   :  { %622 = vpow2.f32 %v377_v44  ;;  %417 = vadd.xlane.f32.xlu2 %v619_v45 }
 0x13b   :  { %624 = vpow2.f32 %v371_v48 }
 0x13c   :  { %v346_v47 = vpop.xlane.xlu2 %345 }
 0x13d   :  { %v863_v49 = vsub.f32 %v801_v62, %v346_v47  ;;  %v348_v53 = vpop.xlane.xlu0 %347 }
 0x13e   :  { %v332_v50 = vpop.xlane.xlu1 %331  ;;  %v871_v57 = vsub.f32 %v805_v63, %v348_v53 }
 0x13f   :  { %v621_v51 = vpop.eup %620  ;;  %v393_v52 = vmul.f32 1.442695, %v863_v49  ;;  %v867_v54 = vsub.f32 %v811_v0, %v332_v50 }
 0x140   :  { %v623_v55 = vpop.eup %622  ;;  %v395_v58 = vmul.f32 1.442695, %v871_v57 }
 0x141   :  { %v379_v56 = vmul.f32 1.442695, %v867_v54  ;;  %419 = vadd.xlane.f32.xlu0 %v621_v51  ;;  %409 = vadd.xlane.f32.xlu1 %v623_v55  ;;  %626 = vpow2.f32 %v393_v52  ;;  %v625_v60 = vpop.eup %624 }
 0x143   :  { %628 = vpow2.f32 %v379_v56 }
 0x144   :  { %630 = vpow2.f32 %v395_v58 }
 0x146   :  { %v344_v59 = vpop.xlane.xlu1 %343 }
 0x147   :  { %v875_v61 = vsub.f32 %v817_v2, %v344_v59  ;;  %v627_v62 = vpop.eup %626 }
 0x149   :  { %v629_v0 = vpop.eup %628  ;;  %v391_v1 = vmul.f32 1.442695, %v875_v61  ;;  %425 = vadd.xlane.f32.xlu0 %v627_v62  ;;  %403 = vadd.xlane.f32.xlu1 %v625_v60 }
 0x14a   :  { %411 = vadd.xlane.f32.xlu2 %v629_v0  ;;  %v631_v3 = vpop.eup %630 }
 0x14b   :  { %632 = vpow2.f32 %v391_v1 }
 0x151   :  { %v633_v63 = vpop.eup %632  ;;  %427 = vadd.xlane.f32.xlu1 %v631_v3 }
 0x152   :  { %423 = vadd.xlane.f32.xlu2 %v633_v63 }
 0x194   :  { %v406_v4 = vpop.xlane.xlu2 %405 }
 0x195   :  { %634 = vlog2.f32 %v406_v4  ;;  %v398_v7 = vpop.xlane.xlu1 %397 }
 0x196   :  { %636 = vlog2.f32 %v398_v7 }
 0x19b   :  { %v635_v8 = vpop.eup %634 }
 0x19c   :  { %v637_v2 = vpop.eup %636  ;;  %v438_v9 = vmul.f32 0.6931472, %v635_v8  ;;  %v414_v10 = vpop.xlane.xlu0 %413 }
 0x19d   :  { %v430_v13 = vmul.f32 0.6931472, %v637_v2  ;;  %638 = vlog2.f32 %v414_v10  ;;  %v422_v14 = vpop.xlane.xlu1 %421 }
 0x19e   :  { %v465_v15 = vsub.f32 %v820_v5, %v438_v9  ;;  %640 = vlog2.f32 %v422_v14 }
 0x19f   :  { %v461_v16 = vsub.f32 %v822_v6, %v430_v13 }
 0x1a0   :  { %481 = vst [vmem:[%s945_s3 + $0x20] sm:$0xff] %v465_v15 }
 0x1a1   :  { %477 = vst [vmem:[%s945_s3] sm:$0xff] %v461_v16 }
 0x1a3   :  { %v639_v17 = vpop.eup %638 }
 0x1a4   :  { %v641_v18 = vpop.eup %640  ;;  %v446_v21 = vmul.f32 0.6931472, %v639_v17  ;;  %v408_v22 = vpop.xlane.xlu0 %407 }
 0x1a5   :  { %v454_v23 = vmul.f32 0.6931472, %v641_v18  ;;  %v400_v24 = vpop.xlane.xlu2 %399  ;;  %642 = vlog2.f32 %v408_v22 }
 0x1a6   :  { %v469_v5 = vsub.f32 %v826_v11, %v446_v21  ;;  %644 = vlog2.f32 %v400_v24 }
 0x1a7   :  { %v473_v6 = vsub.f32 %v828_v12, %v454_v23 }
 0x1a8   :  { %485 = vst [vmem:[%s945_s3 + $0x40] sm:$0xff] %v469_v5 }
 0x1a9   :  { %489 = vst [vmem:[%s945_s3 + $0x60] sm:$0xff] %v473_v6 }
 0x1ab   :  { %v643_v25 = vpop.eup %642 }
 0x1ac   :  { %v645_v27 = vpop.eup %644  ;;  %v440_v28 = vmul.f32 0.6931472, %v643_v25  ;;  %v402_v30 = vpop.xlane.xlu0 %401 }
 0x1ad   :  { %v416_v32 = vpop.xlane.xlu1 %415  ;;  %v432_v33 = vmul.f32 0.6931472, %v645_v27  ;;  %646 = vlog2.f32 %v402_v30  ;;  %v418_v34 = vpop.xlane.xlu2 %417 }
 0x1ae   :  { %v466_v11 = vsub.f32 %v832_v19, %v440_v28  ;;  %648 = vlog2.f32 %v418_v34 }
 0x1af   :  { %v462_v12 = vsub.f32 %v834_v20, %v432_v33  ;;  %650 = vlog2.f32 %v416_v32 }
 0x1b0   :  { %482 = vst [vmem:[%s945_s3 + $0x28] sm:$0xff] %v466_v11 }
 0x1b1   :  { %478 = vst [vmem:[%s945_s3 + $0x8] sm:$0xff] %v462_v12 }
 0x1b3   :  { %v647_v35 = vpop.eup %646 }
 0x1b4   :  { %v649_v36 = vpop.eup %648  ;;  %v434_v38 = vmul.f32 0.6931472, %v647_v35  ;;  %v420_v40 = vpop.xlane.xlu0 %419 }
 0x1b5   :  { %v410_v41 = vpop.xlane.xlu1 %409  ;;  %v651_v42 = vpop.eup %650  ;;  %v450_v43 = vmul.f32 0.6931472, %v649_v36  ;;  %652 = vlog2.f32 %v420_v40 }
 0x1b6   :  { %v463_v19 = vsub.f32 %v839_v26, %v434_v38  ;;  %v448_v20 = vmul.f32 0.6931472, %v651_v42  ;;  %654 = vlog2.f32 %v410_v41 }
 0x1b7   :  { %v471_v44 = vsub.f32 %v846_v31, %v450_v43 }
 0x1b8   :  { %479 = vst [vmem:[%s945_s3 + $0x10] sm:$0xff] %v463_v19  ;;  %v470_v45 = vsub.f32 %v843_v29, %v448_v20 }
 0x1b9   :  { %487 = vst [vmem:[%s945_s3 + $0x50] sm:$0xff] %v471_v44 }
 0x1ba   :  { %486 = vst [vmem:[%s945_s3 + $0x48] sm:$0xff] %v470_v45 }
 0x1bb   :  { %v653_v47 = vpop.eup %652 }
 0x1bc   :  { %v655_v26 = vpop.eup %654  ;;  %v452_v48 = vmul.f32 0.6931472, %v653_v47  ;;  %v426_v50 = vpop.xlane.xlu0 %425 }
 0x1bd   :  { %v404_v51 = vpop.xlane.xlu1 %403  ;;  %v442_v31 = vmul.f32 0.6931472, %v655_v26  ;;  %656 = vlog2.f32 %v426_v50  ;;  %v412_v52 = vpop.xlane.xlu2 %411 }
 0x1be   :  { %v472_v53 = vsub.f32 %v851_v37, %v452_v48  ;;  %658 = vlog2.f32 %v412_v52 }
 0x1bf   :  { %v467_v29 = vsub.f32 %v854_v39, %v442_v31  ;;  %660 = vlog2.f32 %v404_v51 }
 0x1c0   :  { %488 = vst [vmem:[%s945_s3 + $0x58] sm:$0xff] %v472_v53 }
 0x1c1   :  { %483 = vst [vmem:[%s945_s3 + $0x30] sm:$0xff] %v467_v29 }
 0x1c3   :  { %v657_v55 = vpop.eup %656 }
 0x1c4   :  { %v659_v56 = vpop.eup %658  ;;  %v458_v58 = vmul.f32 0.6931472, %v657_v55 }
 0x1c5   :  { %v428_v59 = vpop.xlane.xlu1 %427  ;;  %v661_v60 = vpop.eup %660  ;;  %v444_v62 = vmul.f32 0.6931472, %v659_v56 }
 0x1c6   :  { %v424_v0 = vpop.xlane.xlu2 %423  ;;  %662 = vlog2.f32 %v428_v59  ;;  %v475_v37 = vsub.f32 %v863_v49, %v458_v58  ;;  %v436_v39 = vmul.f32 0.6931472, %v661_v60 }
 0x1c7   :  { %664 = vlog2.f32 %v424_v0  ;;  %v468_v1 = vsub.f32 %v867_v54, %v444_v62 }
 0x1c8   :  { %491 = vst [vmem:[%s945_s3 + $0x70] sm:$0xff] %v475_v37  ;;  %v464_v3 = vsub.f32 %v859_v46, %v436_v39 }
 0x1c9   :  { %484 = vst [vmem:[%s945_s3 + $0x38] sm:$0xff] %v468_v1 }
 0x1ca   :  { %480 = vst [vmem:[%s945_s3 + $0x18] sm:$0xff] %v464_v3 }
 0x1cc   :  { %v663_v63 = vpop.eup %662 }
 0x1cd   :  { %v665_v49 = vpop.eup %664  ;;  %v460_v4 = vmul.f32 0.6931472, %v663_v63 }
 0x1ce   :  { %v456_v7 = vmul.f32 0.6931472, %v665_v49 }
 0x1cf   :  { %v476_v54 = vsub.f32 %v871_v57, %v460_v4 }
 0x1d0   :  { %v474_v8 = vsub.f32 %v875_v61, %v456_v7 }
 0x1d1   :  { %492 = vst [vmem:[%s945_s3 + $0x78] sm:$0xff] %v476_v54 }
 0x1d2   :  { %490 = vst [vmem:[%s945_s3 + $0x68] sm:$0xff] %v474_v8 }

</bundles_post_ra>
